<compile_context>
chip_gen: v6e
topology: v6e:2x2x1
jax: 0.10.0
libtpu: 0.0.40
codegen_flags: <defaults>
</compile_context>

<pallas_src>
import functools

import jax
import jax.numpy as jnp
from jax.experimental import pallas as pl
from jax.experimental.pallas import tpu as pltpu

STATE_DIM = 4
HIDDEN_DIM = 24
ACTION_DIM = 2
LANE = 128  # pad hidden / output feature dims to one full lane width


def _round_up(x, m):
    return ((x + m - 1) // m) * m


def qnet_kernel(x_ref, w1_ref, b1_ref, w2_ref, b2_ref, o_ref):
    """One batch tile: fc1 (VPU broadcast-MACs, K=4) -> ReLU -> fc2 (MXU, K=128)."""
    x = x_ref[...]          # (TILE_B, STATE_DIM)  f32
    w1 = w1_ref[...]        # (STATE_DIM, LANE)    f32, cols >= HIDDEN_DIM are zero

    # fc1: contraction dim is only 4 -> a dot would use ~3% of the MXU column
    # and pay full fill/drain latency.  Do it as 4 broadcast multiply-adds on
    # the otherwise-idle VPU (exact f32).
    h = x[:, 0:1] * w1[0:1, :]
    for k in range(1, STATE_DIM):
        h = h + x[:, k:k + 1] * w1[k:k + 1, :]
    h = jnp.maximum(h + b1_ref[...], 0.0)                     # (TILE_B, LANE), f32

    # fc2: full 128-wide contraction on the MXU, f32 accumulation.  Padded
    # rows/cols of w2 are zero, so they contribute nothing.
    out = jnp.dot(h, w2_ref[...], preferred_element_type=jnp.float32)
    out = out + b2_ref[...]                                   # (TILE_B, LANE)

    # Lane-dense store: full 128-wide block, unmasked vst.  The wrapper slices
    # out the first ACTION_DIM columns.
    o_ref[...] = out.astype(o_ref.dtype)


def pad_params(w1, b1, w2, b2):
    """Zero-pad parameters to lane-dense shapes ONCE (not per forward call)."""
    w1p = jnp.zeros((STATE_DIM, LANE), jnp.float32).at[:, :HIDDEN_DIM].set(w1)
    b1p = jnp.zeros((1, LANE), jnp.float32).at[:, :HIDDEN_DIM].set(b1)
    w2p = jnp.zeros((LANE, LANE), jnp.float32).at[:HIDDEN_DIM, :ACTION_DIM].set(w2)
    b2p = jnp.zeros((1, LANE), jnp.float32).at[:, :ACTION_DIM].set(b2)
    return w1p, b1p, w2p, b2p


@functools.partial(jax.jit, static_argnames=("tile_b",))
def qnetwork_forward(x, w1p, b1p, w2p, b2p, *, tile_b=512):
    """x: (B, STATE_DIM) f32; padded params from pad_params(); returns (B, ACTION_DIM)."""
    B = x.shape[0]
    tb = min(tile_b, _round_up(B, 8))          # small B -> single small tile
    b_pad = _round_up(B, tb)
    if b_pad != B:
        x = jnp.pad(x, ((0, b_pad - B), (0, 0)))

    out = pl.pallas_call(
        qnet_kernel,
        out_shape=jax.ShapeDtypeStruct((b_pad, LANE), jnp.float32),
        grid_spec=pltpu.PrefetchScalarGridSpec(
            num_scalar_prefetch=0,
            grid=(b_pad // tb,),
            in_specs=[
                # x streams per batch tile
                pl.BlockSpec((tb, STATE_DIM), lambda i: (i, 0)),
                # weights / biases: constant block index -> VMEM-resident,
                # DMA'd once and reused across all grid steps
                pl.BlockSpec((STATE_DIM, LANE), lambda i: (0, 0)),
                pl.BlockSpec((1, LANE), lambda i: (0, 0)),
                pl.BlockSpec((LANE, LANE), lambda i: (0, 0)),
                pl.BlockSpec((1, LANE), lambda i: (0, 0)),
            ],
            out_specs=pl.BlockSpec((tb, LANE), lambda i: (i, 0)),
        ),
        compiler_params=pltpu.CompilerParams(
            dimension_semantics=("parallel",)),  # shard batch across TCs (v7x)
    )(x, w1p, b1p, w2p, b2p)

    return out[:B, :ACTION_DIM]


def init_params(key):
    # Deterministic init mimicking PyTorch's default Linear init:
    # U(-1/sqrt(fan_in), 1/sqrt(fan_in)) for both weights and biases.
    k1, k2, k3, k4 = jax.random.split(key, 4)
    bound1 = 1.0 / jnp.sqrt(STATE_DIM)
    bound2 = 1.0 / jnp.sqrt(HIDDEN_DIM)
    w1 = jax.random.uniform(k1, (STATE_DIM, HIDDEN_DIM), jnp.float32, -bound1, bound1)
    b1 = jax.random.uniform(k2, (1, HIDDEN_DIM), jnp.float32, -bound1, bound1)
    w2 = jax.random.uniform(k3, (HIDDEN_DIM, ACTION_DIM), jnp.float32, -bound2, bound2)
    b2 = jax.random.uniform(k4, (1, ACTION_DIM), jnp.float32, -bound2, bound2)
    return w1, b1, w2, b2


def _reference(x, w1, b1, w2, b2):
    # f32-accurate reference (HIGHEST precision so the reference is not itself
    # bf16-rounded on TPU).
    h = jnp.maximum(jnp.dot(x, w1, precision=jax.lax.Precision.HIGHEST) + b1, 0.0)
    return jnp.dot(h, w2, precision=jax.lax.Precision.HIGHEST) + b2


if __name__ == "__main__":
    key = jax.random.PRNGKey(0)
    k_x, k_p = jax.random.split(key)

    batch = 8
    x = jax.random.normal(k_x, (batch, STATE_DIM), jnp.float32)
    w1, b1, w2, b2 = init_params(k_p)
    params = pad_params(w1, b1, w2, b2)

    out = qnetwork_forward(x, *params)
    jax.block_until_ready(out)

    ref = _reference(x, w1, b1, w2, b2)
    assert out.shape == (batch, ACTION_DIM)
    # Loose tolerance: the in-kernel MXU dot uses default matmul precision
    # (may round operands through bf16), while the reference is full f32.
    assert jnp.allclose(out, ref, atol=2e-2, rtol=2e-2), (out, ref)

    # Also exercise the tiled / multi-grid-step path (replay-batch sized).
    xb = jax.random.normal(k_x, (1000, STATE_DIM), jnp.float32)
    outb = qnetwork_forward(xb, *params)
    jax.block_until_ready(outb)
    refb = _reference(xb, w1, b1, w2, b2)
    assert outb.shape == (1000, ACTION_DIM)
    assert jnp.allclose(outb, refb, atol=2e-2, rtol=2e-2)

    # TODO(synk): for the full DQN training step, fuse the target-network pass
    # and TD-error computation into the same kernel to amortize launch overhead.
    print("KERNEL_OK")
</pallas_src>

<mosaic_0001>
module attributes {stable_mosaic.version = 11 : i64} {
  func.func @qnet_kernel(%arg0: i32, %arg1: memref<8x4xf32, #tpu.memory_space<vmem>>, %arg2: memref<4x128xf32, #tpu.memory_space<vmem>>, %arg3: memref<1x128xf32, #tpu.memory_space<vmem>>, %arg4: memref<128x128xf32, #tpu.memory_space<vmem>>, %arg5: memref<1x128xf32, #tpu.memory_space<vmem>>, %arg6: memref<8x128xf32, #tpu.memory_space<vmem>>) attributes {dimension_semantics = [#tpu.dimension_semantics<parallel>], iteration_bounds = array<i64: 1>, scalar_prefetch = 0 : i64, scratch_operands = 0 : i64, tpu.core_type = #tpu.core_type<tc>, window_params = [{transform_indices = @transform_0, window_bounds = array<i64: 8, 4>}, {pipeline_mode = #tpu.pipeline_mode<synchronous>, transform_indices = @transform_1, window_bounds = array<i64: 4, 128>}, {pipeline_mode = #tpu.pipeline_mode<synchronous>, transform_indices = @transform_2, window_bounds = array<i64: 1, 128>}, {pipeline_mode = #tpu.pipeline_mode<synchronous>, transform_indices = @transform_3, window_bounds = array<i64: 128, 128>}, {pipeline_mode = #tpu.pipeline_mode<synchronous>, transform_indices = @transform_4, window_bounds = array<i64: 1, 128>}, {transform_indices = @transform_5, window_bounds = array<i64: 8, 128>}]} {
    %c0 = arith.constant 0 : index
    %c0_0 = arith.constant 0 : index
    %0 = vector.load %arg1[%c0, %c0_0] : memref<8x4xf32, #tpu.memory_space<vmem>>, vector<8x4xf32>
    %c0_1 = arith.constant 0 : index
    %c0_2 = arith.constant 0 : index
    %1 = vector.load %arg2[%c0_1, %c0_2] : memref<4x128xf32, #tpu.memory_space<vmem>>, vector<4x128xf32>
    %2 = vector.extract_strided_slice %0 {offsets = [0, 0], sizes = [8, 1], strides = [1, 1]} : vector<8x4xf32> to vector<8x1xf32>
    %3 = vector.extract_strided_slice %1 {offsets = [0, 0], sizes = [1, 128], strides = [1, 1]} : vector<4x128xf32> to vector<1x128xf32>
    %4 = vector.broadcast %2 : vector<8x1xf32> to vector<8x128xf32>
    %5 = vector.broadcast %3 : vector<1x128xf32> to vector<8x128xf32>
    %6 = arith.mulf %4, %5 : vector<8x128xf32>
    %7 = vector.extract_strided_slice %0 {offsets = [0, 1], sizes = [8, 1], strides = [1, 1]} : vector<8x4xf32> to vector<8x1xf32>
    %8 = vector.extract_strided_slice %1 {offsets = [1, 0], sizes = [1, 128], strides = [1, 1]} : vector<4x128xf32> to vector<1x128xf32>
    %9 = vector.broadcast %7 : vector<8x1xf32> to vector<8x128xf32>
    %10 = vector.broadcast %8 : vector<1x128xf32> to vector<8x128xf32>
    %11 = arith.mulf %9, %10 : vector<8x128xf32>
    %12 = arith.addf %6, %11 : vector<8x128xf32>
    %13 = vector.extract_strided_slice %0 {offsets = [0, 2], sizes = [8, 1], strides = [1, 1]} : vector<8x4xf32> to vector<8x1xf32>
    %14 = vector.extract_strided_slice %1 {offsets = [2, 0], sizes = [1, 128], strides = [1, 1]} : vector<4x128xf32> to vector<1x128xf32>
    %15 = vector.broadcast %13 : vector<8x1xf32> to vector<8x128xf32>
    %16 = vector.broadcast %14 : vector<1x128xf32> to vector<8x128xf32>
    %17 = arith.mulf %15, %16 : vector<8x128xf32>
    %18 = arith.addf %12, %17 : vector<8x128xf32>
    %19 = vector.extract_strided_slice %0 {offsets = [0, 3], sizes = [8, 1], strides = [1, 1]} : vector<8x4xf32> to vector<8x1xf32>
    %20 = vector.extract_strided_slice %1 {offsets = [3, 0], sizes = [1, 128], strides = [1, 1]} : vector<4x128xf32> to vector<1x128xf32>
    %21 = vector.broadcast %19 : vector<8x1xf32> to vector<8x128xf32>
    %22 = vector.broadcast %20 : vector<1x128xf32> to vector<8x128xf32>
    %23 = arith.mulf %21, %22 : vector<8x128xf32>
    %24 = arith.addf %18, %23 : vector<8x128xf32>
    %c0_3 = arith.constant 0 : index
    %c0_4 = arith.constant 0 : index
    %25 = vector.load %arg3[%c0_3, %c0_4] : memref<1x128xf32, #tpu.memory_space<vmem>>, vector<1x128xf32>
    %26 = vector.broadcast %25 : vector<1x128xf32> to vector<8x128xf32>
    %27 = arith.addf %24, %26 : vector<8x128xf32>
    %cst = arith.constant 0.000000e+00 : f32
    %28 = vector.broadcast %cst : f32 to vector<8x128xf32>
    %29 = arith.maximumf %27, %28 : vector<8x128xf32>
    %c0_5 = arith.constant 0 : index
    %c0_6 = arith.constant 0 : index
    %30 = vector.load %arg4[%c0_5, %c0_6] : memref<128x128xf32, #tpu.memory_space<vmem>>, vector<128x128xf32>
    %cst_7 = arith.constant dense<0.000000e+00> : vector<8x128xf32>
    %31 = tpu.matmul %29, %30, %cst_7 {dimension_numbers = #tpu.dot_dimension_numbers<[1], [0], [0], [1], [0, 0, 1, 1], [], []>} : vector<8x128xf32>, vector<128x128xf32>, vector<8x128xf32> -> vector<8x128xf32>
    %c0_8 = arith.constant 0 : index
    %c0_9 = arith.constant 0 : index
    %32 = vector.load %arg5[%c0_8, %c0_9] : memref<1x128xf32, #tpu.memory_space<vmem>>, vector<1x128xf32>
    %33 = vector.broadcast %32 : vector<1x128xf32> to vector<8x128xf32>
    %34 = arith.addf %31, %33 : vector<8x128xf32>
    %c0_10 = arith.constant 0 : index
    %c0_11 = arith.constant 0 : index
    %35 = vector.load %arg6[%c0_10, %c0_11] : memref<8x128xf32, #tpu.memory_space<vmem>>, vector<8x128xf32>
    tpu.vector_store %arg6[%c0_10, %c0_11], %34 {strides = array<i32>} : memref<8x128xf32, #tpu.memory_space<vmem>>, vector<8x128xf32>,
    return
  }
  func.func @transform_0(%arg0: i32) -> (i32, i32) {
    %c0_i32 = arith.constant 0 : i32
    %c0_i32_0 = arith.constant 0 : i32
    return %arg0, %c0_i32 : i32, i32
  }
  func.func @transform_1(%arg0: i32) -> (i32, i32) {
    %c0_i32 = arith.constant 0 : i32
    %c0_i32_0 = arith.constant 0 : i32
    %c0_i32_1 = arith.constant 0 : i32
    return %c0_i32, %c0_i32_0 : i32, i32
  }
  func.func @transform_2(%arg0: i32) -> (i32, i32) {
    %c0_i32 = arith.constant 0 : i32
    %c0_i32_0 = arith.constant 0 : i32
    %c0_i32_1 = arith.constant 0 : i32
    return %c0_i32, %c0_i32_0 : i32, i32
  }
  func.func @transform_3(%arg0: i32) -> (i32, i32) {
    %c0_i32 = arith.constant 0 : i32
    %c0_i32_0 = arith.constant 0 : i32
    %c0_i32_1 = arith.constant 0 : i32
    return %c0_i32, %c0_i32_0 : i32, i32
  }
  func.func @transform_4(%arg0: i32) -> (i32, i32) {
    %c0_i32 = arith.constant 0 : i32
    %c0_i32_0 = arith.constant 0 : i32
    %c0_i32_1 = arith.constant 0 : i32
    return %c0_i32, %c0_i32_0 : i32, i32
  }
  func.func @transform_5(%arg0: i32) -> (i32, i32) {
    %c0_i32 = arith.constant 0 : i32
    %c0_i32_0 = arith.constant 0 : i32
    return %arg0, %c0_i32 : i32, i32
  }
}

</mosaic_0001>

<bundles_post_ra>
// kernel: qnetwork_forward.1
= control target key start
LH: loop header
LB: loop body
LE: loop exit
PB: predicated region body
PF: predicated region fallthrough
CT: control target
= control target key end

     0   :  { %10 = vsyncpa [#allocation3], 0  ;;  %s274_s18 = smov [#allocation2]   ;;  %s331_s0 = inlined_call_operand.vmem [shape: f32[8,4], index: 0, kind: input, shape index: {}]   ;;  %s332_s1 = inlined_call_operand.vmem [shape: f32[4,128], index: 1, kind: input, shape index: {}]   ;;  %s333_s2 = inlined_call_operand.vmem [shape: f32[1,128], index: 2, kind: input, shape index: {}]   ;;  %s334_s3 = inlined_call_operand.hbm [shape: f32[128,128], index: 3, kind: input, shape index: {}]   ;;  %s335_s4 = inlined_call_operand.vmem [shape: f32[1,128], index: 4, kind: input, shape index: {}]   ;;  %s336_s5 = inlined_call_operand.vmem [shape: f32[8,128], index: 5, kind: output, shape index: {}]  }
   0x1   :  { %s22_s19 = sshll.u32 %s274_s18, 4  ;;  %s23_s19 = int_to_ptr.vmem [resolvable:$true] %s22_s19 }
   0x2   :  { %s260_s20 = scalar_lea.vmem %s23_s19, 2048  ;;  %p265_p1 = scmp.lt.s32.totalorder %s23_s19, %s23_s19 }
   0x3   :  { %p261_p0 = scmp.ne.s32.totalorder %s23_s19, %s260_s20  ;;  %p266_p2 = scmp.lt.s32.totalorder %s260_s20, %s260_s20 }
   0x5   :  { %p267_p3 = por %p266_p2, %p265_p1 }
   0x7   :  { %p268_p4 = pnand %p267_p3, %p261_p0 }
   0x9   :  { %271 = shalt.err (!%p268_p4)
}
   0xa   :  { %s275_s21 = smov 128   ;;  %s276_s22 = smov 8  }
   0xb   :  { %28 = dma.hbm_to_vmem [thread:$0]  %s334_s3, 2048, %s23_s19, [#allocation3], %s275_s21, %s275_s21, %s276_s22  }
   0xc   :  { %272 = dma.done.wait [#allocation3], 2048  }
   0xd   :  { %273 = vsyncadd [#allocation3], 4294965248  ;;  %v277_v0 = vmov 0   ;;  %v278_v1 = vmov 2   ;;  %v279_v2 = vmov 0.0   ;;  %v34_v3 = vld [vmem:[%s331_s0] sm:$0xff]  ;;  %v41_v22 = vlaneseq }
   0xe   :  { %247 = vset.pattern.permute.xlu0 %v277_v0  ;;  %249 = vset.pattern.permute.xlu1 %v278_v1  ;;  %v100_v4 = vld [vmem:[#allocation2 + $0x78] sm:$0xff]  ;;  %v99_v5 = vld [vmem:[#allocation2 + $0x70] sm:$0xff]  ;;  %v280_v6 = vmov 1   ;;  %v281_v7 = vmov 3   ;;  %v98_v8 = vld [vmem:[#allocation2 + $0x68] sm:$0xff]  ;;  %vm282_vm0 = vmmov 0  }
   0xf   :  { %203 = vmatprep.subr.mxu0 %v279_v2  ;;  %38 = vperm.xlu0 %247, %v34_v3   ;;  %v97_v9 = vld [vmem:[#allocation2 + $0x60] sm:$0xff]  ;;  %v96_v10 = vld [vmem:[#allocation2 + $0x58] sm:$0xff]  ;;  %v95_v11 = vld [vmem:[#allocation2 + $0x50] sm:$0xff]  ;;  %v42_v23 = vshrl.u32 %v41_v22, 7 }
  0x10   :  { %57 = vperm.xlu1 %249, %v34_v3   ;;  %204 = vmatpush3.msra.mxu0 %v100_v4  ;;  %v94_v12 = vld [vmem:[#allocation2 + $0x48] sm:$0xff]  ;;  %v93_v13 = vld [vmem:[#allocation2 + $0x40] sm:$0xff]  ;;  %v92_v14 = vld [vmem:[#allocation2 + $0x38] sm:$0xff] }
  0x11   :  { %205 = vmatprep.subr.mxu0 %v279_v2  ;;  %235 = vmatprep.mubr.msk.f32.mxu0 %vm282_vm0, %v279_v2  ;;  %v91_v15 = vld [vmem:[#allocation2 + $0x30] sm:$0xff]  ;;  %v90_v16 = vld [vmem:[#allocation2 + $0x28] sm:$0xff]  ;;  %v89_v17 = vld [vmem:[#allocation2 + $0x20] sm:$0xff]  ;;  %v43_v24 = vsub.s32 0, %v42_v23  ;;  %v52_v25 = vsub.s32 1, %v42_v23  ;;  %v62_v28 = vsub.s32 2, %v42_v23 }
  0x12   :  { %206 = vmatpush3.msra.mxu0 %v99_v5  ;;  %v88_v18 = vld [vmem:[#allocation2 + $0x18] sm:$0xff]  ;;  %v87_v19 = vld [vmem:[#allocation2 + $0x10] sm:$0xff]  ;;  %v86_v20 = vld [vmem:[#allocation2 + $0x8] sm:$0xff]  ;;  %v72_v30 = vsub.s32 3, %v42_v23 }
  0x13   :  { %248 = vset.pattern.permute.xlu0 %v280_v6  ;;  %207 = vmatprep.subr.mxu0 %v279_v2  ;;  %v85_v21 = vld [vmem:[#allocation2] sm:$0xff] }
  0x14   :  { %250 = vset.pattern.permute.xlu1 %v281_v7  ;;  %47 = vperm.xlu0 %248, %v34_v3   ;;  %v35_v26 = vld [vmem:[%s332_s1] sm:$0xf] }
  0x15   :  { %67 = vperm.xlu1 %250, %v34_v3   ;;  %208 = vmatpush3.msra.mxu0 %v98_v8  ;;  %v44_v31 = vrot.slane %v35_v26, %v43_v24  ;;  %v53_v32 = vrot.slane %v35_v26, %v52_v25  ;;  %v63_v33 = vrot.slane %v35_v26, %v62_v28  ;;  %v184_v43 = vld [vmem:[%s333_s2] ss:$0 sm:$0xff] }
  0x16   :  { %209 = vmatprep.subr.mxu0 %v279_v2  ;;  %v73_v34 = vrot.slane %v35_v26, %v72_v30  ;;  %v185_v47 = vld [vmem:[%s335_s4] ss:$0 sm:$0xff] }
  0x17   :  { %210 = vmatpush3.msra.mxu0 %v97_v9 }
  0x18   :  { %251 = vset.pattern.permute.xlu0 %v281_v7  ;;  %211 = vmatprep.subr.mxu0 %v279_v2 }
  0x19   :  { %212 = vmatpush3.msra.mxu0 %v96_v10 }
  0x1a   :  { %213 = vmatprep.subr.mxu0 %v279_v2 }
  0x1b   :  { %214 = vmatpush3.msra.mxu0 %v95_v11 }
  0x1c   :  { %215 = vmatprep.subr.mxu0 %v279_v2 }
  0x1d   :  { %216 = vmatpush3.msra.mxu0 %v94_v12 }
  0x1e   :  { %217 = vmatprep.subr.mxu0 %v279_v2 }
  0x1f   :  { %218 = vmatpush3.msra.mxu0 %v93_v13 }
  0x20   :  { %219 = vmatprep.subr.mxu0 %v279_v2 }
  0x21   :  { %220 = vmatpush3.msra.mxu0 %v92_v14 }
  0x22   :  { %221 = vmatprep.subr.mxu0 %v279_v2 }
  0x23   :  { %222 = vmatpush3.msra.mxu0 %v91_v15 }
  0x24   :  { %223 = vmatprep.subr.mxu0 %v279_v2 }
  0x25   :  { %224 = vmatpush3.msra.mxu0 %v90_v16 }
  0x26   :  { %225 = vmatprep.subr.mxu0 %v279_v2 }
  0x27   :  { %226 = vmatpush3.msra.mxu0 %v89_v17 }
  0x28   :  { %227 = vmatprep.subr.mxu0 %v279_v2 }
  0x29   :  { %228 = vmatpush3.msra.mxu0 %v88_v18 }
  0x2a   :  { %229 = vmatprep.subr.mxu0 %v279_v2 }
  0x2b   :  { %230 = vmatpush3.msra.mxu0 %v87_v19 }
  0x2c   :  { %231 = vmatprep.subr.mxu0 %v279_v2 }
  0x2d   :  { %232 = vmatpush3.msra.mxu0 %v86_v20 }
  0x2e   :  { %233 = vmatprep.subr.mxu0 %v279_v2 }
  0x2f   :  { %234 = vmatpush3.msra.mxu0 %v85_v21 }
  0x8a   :  { %v39_v27 = vpop.permute.xlu0 %38 }
  0x8b   :  { %v58_v29 = vpop.permute.xlu1 %57  ;;  %v45_v37 = vmul.f32 %v44_v31, %v39_v27 }
  0x8c   :  { %v64_v39 = vmul.f32 %v63_v33, %v58_v29 }
  0x8f   :  { %v48_v35 = vpop.permute.xlu0 %47 }
  0x90   :  { %v68_v36 = vpop.permute.xlu1 %67  ;;  %v54_v38 = vmul.f32 %v53_v32, %v48_v35 }
  0x91   :  { %v74_v41 = vmul.f32 %v73_v34, %v68_v36 }
  0x92   :  { %v55_v40 = vadd.f32 %v54_v38, %v45_v37 }
  0x94   :  { %v65_v42 = vadd.f32 %v64_v39, %v55_v40 }
  0x96   :  { %v75_v44 = vadd.f32 %v74_v41, %v65_v42 }
  0x98   :  { %v83_v45 = vadd.f32 %v184_v43, %v75_v44 }
  0x9a   :  { %v84_v46 = vmax.f32 %v83_v45, 0.0 }
  0x9c   :  { %236 = vmatmul.mubr.f32.vlgmr.msra.gmra.mxu0 %v84_v46 }
 0x15c   :  { %v174_v48 = vpop.f32.mrf.mxu0 }
 0x15d   :  { %v175_v49 = vadd.f32 %v185_v47, %v174_v48 }
 0x15e   :  { %v237_v50 = vpop.f32.mrf.mxu0 }
 0x15f   :  { %178 = vst [vmem:[%s336_s5] sm:$0xff] %v175_v49 }
 0x160   :  { %183 = vsyncpa [#allocation3], 1 }

</bundles_post_ra>
